<compile_context>
chip_gen: v5e
topology: v5e:2x2
jax: 0.10.0
libtpu: 0.0.40
codegen_flags: <defaults>
</compile_context>

<pallas_src>
import functools
import numpy as np
import jax
import jax.numpy as jnp
from jax.experimental import pallas as pl
from jax.experimental.pallas import tpu as pltpu


def _irrep_slices(irreps):
    """irreps: list of l values (one instance each) -> ((lo, hi), ...) per instance, total dim."""
    slices, off = [], 0
    for l in irreps:
        dim = 2 * int(l) + 1
        slices.append((off, off + dim))
        off += dim
    return tuple(slices), off


def _dropout_kernel(x_ref, keep_ref, o_ref, *, slices):
    # x_ref : (B_blk, D, C)       input block
    # keep_ref: (B_blk, I, C)     per-(sample, irrep instance, channel) scaled keep mask
    # o_ref : (B_blk, D, C)       output block
    # For each irrep instance, broadcast its (B_blk, 1, C) mask row over the
    # instance's 2l+1 components (static sublane slices -> plain VPU multiply).
    for idx, (lo, hi) in enumerate(slices):
        o_ref[:, lo:hi, :] = x_ref[:, lo:hi, :] * keep_ref[:, idx:idx + 1, :]


def equivariant_dropout(x, key, *, p=0.5, irreps=None, irrep_wise=True,
                        training=True, work_on_eval=False,
                        block_bytes=1 << 20):
    """Forward pass of equitorch.nn.Dropout. x: (N, irreps_dim, C)."""
    if x.ndim != 3:
        raise ValueError("expected input of shape (N, irreps_dim, C)")
    if p < 0.0 or p > 1.0:
        raise ValueError(f"dropout probability has to be between 0 and 1, but got {p}")
    if (not training) and (not work_on_eval):
        return x
    if p == 0.0:
        return x
    if p == 1.0:
        # torch dropout with p=1 zeroes everything; avoid inf scale.
        return jnp.zeros_like(x)

    N, D, C = x.shape
    if irrep_wise:
        if irreps is None:
            raise ValueError("irreps must be provided if irrep_wise is True")
        slices, total_dim = _irrep_slices(irreps)
        if total_dim != D:
            raise ValueError(f"irreps_dim mismatch: irreps give {total_dim}, input has {D}")
    else:
        # dropout1d: one decision per (n, c) across the whole irreps_dim axis.
        slices = ((0, D),)
    n_inst = len(slices)

    # Instance-level keep mask with the 1/(1-p) survivor scale folded in.
    # TODO(synk): on real hardware this could instead be drawn in-kernel with
    # pltpu.prng_seed/prng_random_bits to avoid materializing the (small)
    # instance-level mask in HBM; done in the wrapper here for portability.
    scale = 1.0 / (1.0 - p)
    u = jax.random.uniform(key, (N, n_inst, C), dtype=jnp.float32)
    keep = jnp.where(u >= jnp.float32(p), jnp.float32(scale), jnp.float32(0.0)).astype(x.dtype)

    # Batch tiling: ~block_bytes of x per grid step (single block when N is small).
    bytes_per_sample = int(D) * int(C) * x.dtype.itemsize
    b_blk = int(max(1, min(N, block_bytes // max(1, bytes_per_sample))))
    if b_blk >= 8:
        b_blk = (b_blk // 8) * 8      # sublane-friendly block count
    grid = (pl.cdiv(N, b_blk),)

    kernel = functools.partial(_dropout_kernel, slices=slices)
    return pl.pallas_call(
        kernel,
        out_shape=jax.ShapeDtypeStruct((N, D, C), x.dtype),
        grid=grid,
        in_specs=[
            pl.BlockSpec((b_blk, D, C), lambda i: (i, 0, 0)),
            pl.BlockSpec((b_blk, n_inst, C), lambda i: (i, 0, 0)),
        ],
        out_specs=pl.BlockSpec((b_blk, D, C), lambda i: (i, 0, 0)),
        compiler_params=pltpu.CompilerParams(
            dimension_semantics=("parallel",)),   # independent per batch block
    )(x, keep)


if __name__ == "__main__":
    key = jax.random.PRNGKey(0)
    kx, kd1, kd2 = jax.random.split(key, 3)

    # irreps l = [0, 1, 2] -> irreps_dim = 1 + 3 + 5 = 9
    irreps = [0, 1, 2]
    N, D, C = 4, 9, 128
    p = 0.5
    scale = 1.0 / (1.0 - p)
    x = jax.random.normal(kx, (N, D, C), dtype=jnp.float32)

    # irrep-wise dropout (training mode)
    y = jax.block_until_ready(
        equivariant_dropout(x, kd1, p=p, irreps=irreps, irrep_wise=True, training=True))

    xn, yn = np.asarray(x), np.asarray(y)
    mask = yn / (xn * scale)
    assert np.all(np.isclose(mask, 0.0, atol=1e-5) | np.isclose(mask, 1.0, atol=1e-5)), \
        "mask values not in {0, 1}"
    for lo, hi in [(0, 1), (1, 4), (4, 9)]:
        blk = mask[:, lo:hi, :]
        assert np.allclose(blk, blk[:, :1, :], atol=1e-5), "mask not constant within irrep"

    # eval mode without work_on_eval -> identity
    y_eval = equivariant_dropout(x, kd1, p=p, irreps=irreps, irrep_wise=True, training=False)
    assert np.allclose(np.asarray(y_eval), xn)

    # p == 1.0 -> all zeros (no inf/NaN)
    y_one = jax.block_until_ready(
        equivariant_dropout(x, kd1, p=1.0, irreps=irreps, irrep_wise=True, training=True))
    assert np.allclose(np.asarray(y_one), 0.0)

    # non-irrep-wise mode (dropout1d semantics): mask constant along irreps_dim
    y2 = jax.block_until_ready(
        equivariant_dropout(x, kd2, p=p, irreps=None, irrep_wise=False, training=True))
    m2 = np.asarray(y2) / (xn * scale)
    assert np.all(np.isclose(m2, 0.0, atol=1e-5) | np.isclose(m2, 1.0, atol=1e-5))
    assert np.allclose(m2, m2[:, :1, :], atol=1e-5), "dropout1d mask not constant along irreps_dim"

    print("KERNEL_OK")
</pallas_src>

<mosaic_0001>
module attributes {stable_mosaic.version = 11 : i64} {
  func.func @_dropout_kernel(%arg0: i32, %arg1: memref<4x9x128xf32, #tpu.memory_space<vmem>>, %arg2: memref<4x3x128xf32, #tpu.memory_space<vmem>>, %arg3: memref<4x9x128xf32, #tpu.memory_space<vmem>>) attributes {dimension_semantics = [#tpu.dimension_semantics<parallel>], iteration_bounds = array<i64: 1>, scalar_prefetch = 0 : i64, scratch_operands = 0 : i64, tpu.core_type = #tpu.core_type<tc>, window_params = [{transform_indices = @transform_0, window_bounds = array<i64: 4, 9, 128>}, {transform_indices = @transform_1, window_bounds = array<i64: 4, 3, 128>}, {transform_indices = @transform_2, window_bounds = array<i64: 4, 9, 128>}]} {
    %c0 = arith.constant 0 : index
    %c0_0 = arith.constant 0 : index
    %c0_1 = arith.constant 0 : index
    %0 = vector.load %arg1[%c0, %c0_0, %c0_1] : memref<4x9x128xf32, #tpu.memory_space<vmem>>, vector<4x1x128xf32>
    %c0_2 = arith.constant 0 : index
    %c0_3 = arith.constant 0 : index
    %c0_4 = arith.constant 0 : index
    %1 = vector.load %arg2[%c0_2, %c0_3, %c0_4] : memref<4x3x128xf32, #tpu.memory_space<vmem>>, vector<4x1x128xf32>
    %2 = arith.mulf %0, %1 : vector<4x1x128xf32>
    %c0_5 = arith.constant 0 : index
    %c0_6 = arith.constant 0 : index
    %c0_7 = arith.constant 0 : index
    %3 = vector.load %arg3[%c0_5, %c0_6, %c0_7] : memref<4x9x128xf32, #tpu.memory_space<vmem>>, vector<4x1x128xf32>
    tpu.vector_store %arg3[%c0_5, %c0_6, %c0_7], %2 {strides = array<i32>} : memref<4x9x128xf32, #tpu.memory_space<vmem>>, vector<4x1x128xf32>,
    %c0_8 = arith.constant 0 : index
    %c1 = arith.constant 1 : index
    %c0_9 = arith.constant 0 : index
    %4 = vector.load %arg1[%c0_8, %c1, %c0_9] : memref<4x9x128xf32, #tpu.memory_space<vmem>>, vector<4x3x128xf32>
    %c0_10 = arith.constant 0 : index
    %c1_11 = arith.constant 1 : index
    %c0_12 = arith.constant 0 : index
    %5 = vector.load %arg2[%c0_10, %c1_11, %c0_12] : memref<4x3x128xf32, #tpu.memory_space<vmem>>, vector<4x1x128xf32>
    %6 = vector.broadcast %5 : vector<4x1x128xf32> to vector<4x3x128xf32>
    %7 = arith.mulf %4, %6 : vector<4x3x128xf32>
    %c0_13 = arith.constant 0 : index
    %c1_14 = arith.constant 1 : index
    %c0_15 = arith.constant 0 : index
    %8 = vector.load %arg3[%c0_13, %c1_14, %c0_15] : memref<4x9x128xf32, #tpu.memory_space<vmem>>, vector<4x3x128xf32>
    tpu.vector_store %arg3[%c0_13, %c1_14, %c0_15], %7 {strides = array<i32>} : memref<4x9x128xf32, #tpu.memory_space<vmem>>, vector<4x3x128xf32>,
    %c0_16 = arith.constant 0 : index
    %c4 = arith.constant 4 : index
    %c0_17 = arith.constant 0 : index
    %9 = vector.load %arg1[%c0_16, %c4, %c0_17] : memref<4x9x128xf32, #tpu.memory_space<vmem>>, vector<4x5x128xf32>
    %c0_18 = arith.constant 0 : index
    %c2 = arith.constant 2 : index
    %c0_19 = arith.constant 0 : index
    %10 = vector.load %arg2[%c0_18, %c2, %c0_19] : memref<4x3x128xf32, #tpu.memory_space<vmem>>, vector<4x1x128xf32>
    %11 = vector.broadcast %10 : vector<4x1x128xf32> to vector<4x5x128xf32>
    %12 = arith.mulf %9, %11 : vector<4x5x128xf32>
    %c0_20 = arith.constant 0 : index
    %c4_21 = arith.constant 4 : index
    %c0_22 = arith.constant 0 : index
    %13 = vector.load %arg3[%c0_20, %c4_21, %c0_22] : memref<4x9x128xf32, #tpu.memory_space<vmem>>, vector<4x5x128xf32>
    tpu.vector_store %arg3[%c0_20, %c4_21, %c0_22], %12 {strides = array<i32>} : memref<4x9x128xf32, #tpu.memory_space<vmem>>, vector<4x5x128xf32>,
    return
  }
  func.func @transform_0(%arg0: i32) -> (i32, i32, i32) {
    %c0_i32 = arith.constant 0 : i32
    %c0_i32_0 = arith.constant 0 : i32
    %c0_i32_1 = arith.constant 0 : i32
    return %arg0, %c0_i32, %c0_i32_0 : i32, i32, i32
  }
  func.func @transform_1(%arg0: i32) -> (i32, i32, i32) {
    %c0_i32 = arith.constant 0 : i32
    %c0_i32_0 = arith.constant 0 : i32
    %c0_i32_1 = arith.constant 0 : i32
    return %arg0, %c0_i32, %c0_i32_0 : i32, i32, i32
  }
  func.func @transform_2(%arg0: i32) -> (i32, i32, i32) {
    %c0_i32 = arith.constant 0 : i32
    %c0_i32_0 = arith.constant 0 : i32
    %c0_i32_1 = arith.constant 0 : i32
    return %arg0, %c0_i32, %c0_i32_0 : i32, i32, i32
  }
}

</mosaic_0001>

<bundles_post_ra>
// kernel: tpu_custom_call.1
= control target key start
LH: loop header
LB: loop body
LE: loop exit
PB: predicated region body
PF: predicated region fallthrough
CT: control target
= control target key end

     0   :  { %s202_s0 = inlined_call_operand.vmem [shape: f32[4,9,128], index: 0, kind: input, shape index: {}]   ;;  %s203_s1 = inlined_call_operand.vmem [shape: f32[4,3,128], index: 1, kind: input, shape index: {}]   ;;  %s204_s2 = inlined_call_operand.vmem [shape: f32[4,9,128], index: 2, kind: output, shape index: {}]  }
   0x1   :  { %v11_v0 = vld [vmem:[%s202_s0] sm:$0x1]  ;;  %v12_v2 = vld [vmem:[%s202_s0 + $0x10] sm:$0x1]  ;;  %v16_v4 = vld [vmem:[%s203_s1 + $0x4] sm:$0x1] }
   0x2   :  { %v15_v1 = vld [vmem:[%s203_s1] sm:$0x1]  ;;  %v17_v6 = vld [vmem:[%s203_s1 + $0x8] sm:$0x1]  ;;  %v20_v7 = vmul.f32 %v16_v4, %v12_v2  ;;  %v14_v9 = vld [vmem:[%s202_s0 + $0x30] sm:$0x1] }
   0x3   :  { %v19_v3 = vmul.f32 %v15_v1, %v11_v0  ;;  %v13_v5 = vld [vmem:[%s202_s0 + $0x20] sm:$0x1]  ;;  %v18_v10 = vld [vmem:[%s203_s1 + $0xc] sm:$0x1]  ;;  %v27_v11 = vld [vmem:[%s202_s0 + $0x1] sm:$0x7] }
   0x4   :  { %v21_v8 = vmul.f32 %v17_v6, %v13_v5  ;;  %v22_v12 = vmul.f32 %v18_v10, %v14_v9  ;;  %v71_v13 = vld [vmem:[%s203_s1 + $0x1] ss:$0 sm:$0xff]  ;;  %24 = vst [vmem:[%s204_s2 + $0x10] sm:$0x1] %v20_v7  ;;  %v28_v14 = vld [vmem:[%s202_s0 + $0x11] sm:$0x7] }
   0x5   :  { %23 = vst [vmem:[%s204_s2] sm:$0x1] %v19_v3  ;;  %v39_v15 = vmul.f32 %v71_v13, %v27_v11  ;;  %v72_v16 = vld [vmem:[%s203_s1 + $0x5] ss:$0 sm:$0xff]  ;;  %v29_v17 = vld [vmem:[%s202_s0 + $0x21] sm:$0x7] }
   0x6   :  { %25 = vst [vmem:[%s204_s2 + $0x20] sm:$0x1] %v21_v8  ;;  %v73_v18 = vld [vmem:[%s203_s1 + $0x9] ss:$0 sm:$0xff]  ;;  %v40_v19 = vmul.f32 %v72_v16, %v28_v14  ;;  %v30_v20 = vld [vmem:[%s202_s0 + $0x31] sm:$0x7] }
   0x7   :  { %26 = vst [vmem:[%s204_s2 + $0x30] sm:$0x1] %v22_v12  ;;  %v41_v21 = vmul.f32 %v73_v18, %v29_v17  ;;  %v74_v22 = vld [vmem:[%s203_s1 + $0xd] ss:$0 sm:$0xff]  ;;  %v47_v23 = vld [vmem:[%s202_s0 + $0x4] sm:$0x1f] }
   0x8   :  { %43 = vst [vmem:[%s204_s2 + $0x1] sm:$0x7] %v39_v15  ;;  %v75_v24 = vld [vmem:[%s203_s1 + $0x2] ss:$0 sm:$0xff]  ;;  %v48_v25 = vld [vmem:[%s202_s0 + $0x14] sm:$0x1f]  ;;  %v42_v26 = vmul.f32 %v74_v22, %v30_v20 }
   0x9   :  { %44 = vst [vmem:[%s204_s2 + $0x11] sm:$0x7] %v40_v19  ;;  %v76_v27 = vld [vmem:[%s203_s1 + $0x6] ss:$0 sm:$0xff]  ;;  %v59_v28 = vmul.f32 %v75_v24, %v47_v23  ;;  %v77_v30 = vld [vmem:[%s203_s1 + $0xa] ss:$0 sm:$0xff] }
   0xa   :  { %45 = vst [vmem:[%s204_s2 + $0x21] sm:$0x7] %v41_v21  ;;  %v49_v29 = vld [vmem:[%s202_s0 + $0x24] sm:$0x1f]  ;;  %v60_v31 = vmul.f32 %v76_v27, %v48_v25  ;;  %v50_v32 = vld [vmem:[%s202_s0 + $0x34] sm:$0x1f] }
   0xb   :  { %46 = vst [vmem:[%s204_s2 + $0x31] sm:$0x7] %v42_v26  ;;  %v61_v33 = vmul.f32 %v77_v30, %v49_v29  ;;  %v78_v34 = vld [vmem:[%s203_s1 + $0xe] ss:$0 sm:$0xff] }
   0xc   :  { %63 = vst [vmem:[%s204_s2 + $0x4] sm:$0x1f] %v59_v28  ;;  %v62_v35 = vmul.f32 %v78_v34, %v50_v32 }
   0xd   :  { %64 = vst [vmem:[%s204_s2 + $0x14] sm:$0x1f] %v60_v31 }
   0xe   :  { %65 = vst [vmem:[%s204_s2 + $0x24] sm:$0x1f] %v61_v33 }
   0xf   :  { %66 = vst [vmem:[%s204_s2 + $0x34] sm:$0x1f] %v62_v35 }

</bundles_post_ra>
